<compile_context>
chip_gen: v7x
topology: tpu7x:2x2x1
jax: 0.10.0
libtpu: 0.0.40
codegen_flags: <defaults>
</compile_context>

<pallas_src>
import functools

import numpy as np
import jax
import jax.numpy as jnp
from jax import lax
from jax.experimental import pallas as pl
from jax.experimental.pallas import tpu as pltpu


def _round_up(x, m):
    return ((x + m - 1) // m) * m


def _tpu_settings():
    """Generation-aware tile caps / VMEM limit for the saliency matmul."""
    gen = 6
    try:
        kind = jax.devices()[0].device_kind.lower()
        if "v7" in kind:
            gen = 7
        elif "v6" in kind:
            gen = 6
        elif "v5" in kind:
            gen = 5
    except Exception:  # non-TPU backend / interpret mode: use safe defaults
        pass
    if gen >= 7:
        # v7x: 64 MiB physical VMEM -> keep working set well under ~48 MiB.
        return dict(vmem_limit=48 * 1024 * 1024, tm_cap=512, tn_cap=1024, tk_cap=512)
    # v5e / v6e: 128 MiB physical VMEM -> raise scoped limit, bigger tiles.
    return dict(vmem_limit=96 * 1024 * 1024, tm_cap=1024, tn_cap=1024, tk_cap=512)


def _pick_tile(dim_pad, cap):
    """Largest multiple of 128 that divides dim_pad and is <= cap.

    dim_pad is always a multiple of 128, so this terminates at >= 128.
    """
    t = max(128, (min(cap, dim_pad) // 128) * 128)
    while dim_pad % t:
        t -= 128
    return t


# ----------------------------------------------------------------------------
# Saliency matmul kernel:  sal = p^T @ masks * (1 / n_masks)
#   p_ref   : (tk, tm) bf16  -- slice of p in (n_masks, pixels) layout
#   m_ref   : (tk, tn) bf16  -- slice of masks_flat in (n_masks, HW) layout
#   out_ref : (tm, tn) f32   -- saliency tile (pixels, HW)
#   acc_ref : (tm, tn) f32   -- VMEM accumulator, persistent across k steps
# ----------------------------------------------------------------------------
def _saliency_kernel(p_ref, m_ref, out_ref, acc_ref, *, inv_n):
    @pl.when(pl.program_id(2) == 0)
    def _init():
        acc_ref[...] = jnp.zeros_like(acc_ref)

    # Contract the mask axis (dim 0 of both operands): p^T @ masks on the MXU;
    # the LHS transpose is handled natively, no host transpose of p needed.
    acc_ref[...] += lax.dot_general(
        p_ref[...],
        m_ref[...],
        dimension_numbers=(((0,), (0,)), ((), ())),
        preferred_element_type=jnp.float32,
    )

    @pl.when(pl.program_id(2) == pl.num_programs(2) - 1)
    def _finalize():
        out_ref[...] = acc_ref[...] * inv_n


def _build_saliency_call(P_pad, HW_pad, N_pad, n_masks, settings):
    tm = _pick_tile(P_pad, settings["tm_cap"])
    tn = _pick_tile(HW_pad, settings["tn_cap"])
    tk = _pick_tile(N_pad, settings["tk_cap"])
    grid = (P_pad // tm, HW_pad // tn, N_pad // tk)
    # VMEM footprint (double-buffered bf16 inputs + f32 out + f32 acc) at the
    # caps above stays <= ~16 MiB, comfortably inside every generation's limit.
    return pl.pallas_call(
        functools.partial(_saliency_kernel, inv_n=1.0 / float(n_masks)),
        out_shape=jax.ShapeDtypeStruct((P_pad, HW_pad), jnp.float32),
        grid_spec=pltpu.PrefetchScalarGridSpec(
            num_scalar_prefetch=0,
            grid=grid,
            in_specs=[
                pl.BlockSpec((tk, tm), lambda i, j, k: (k, i)),
                pl.BlockSpec((tk, tn), lambda i, j, k: (k, j)),
            ],
            out_specs=pl.BlockSpec((tm, tn), lambda i, j, k: (i, j)),
            scratch_shapes=[pltpu.VMEM((tm, tn), jnp.float32)],
        ),
        compiler_params=pltpu.CompilerParams(
            dimension_semantics=("parallel", "parallel", "arbitrary"),
            vmem_limit_bytes=settings["vmem_limit"],
        ),
    )


# ----------------------------------------------------------------------------
# Mask generation (setup glue, mirrors SegmentationRISE.generate_masks).
# TODO(synk): skimage reflect-mode order=1 resize approximated with
#             jax.image.resize 'linear' (mask generation is setup, not forward).
# ----------------------------------------------------------------------------
def generate_masks(key, n_masks, s, p1, input_size):
    H, W = input_size
    cell_h = int(np.ceil(H / s))
    cell_w = int(np.ceil(W / s))
    up_h = (s + 1) * cell_h
    up_w = (s + 1) * cell_w
    kg, kx, ky = jax.random.split(key, 3)
    grid = (jax.random.uniform(kg, (n_masks, s, s)) < p1).astype(jnp.float32)
    up = jax.image.resize(grid, (n_masks, up_h, up_w), method="linear")
    offs_x = jax.random.randint(kx, (n_masks,), 0, cell_h)
    offs_y = jax.random.randint(ky, (n_masks,), 0, cell_w)
    masks = jnp.stack(
        [
            jax.lax.dynamic_slice(up[i], (offs_x[i], offs_y[i]), (H, W))
            for i in range(n_masks)
        ]
    )
    return masks.reshape(n_masks, 1, H, W).astype(jnp.float32)


# ----------------------------------------------------------------------------
# Forward pass (== SegmentationRISE.forward).  Returns saliencies (P, H, W).
# ----------------------------------------------------------------------------
_PIX_CHUNK = 4096  # fixed pixel-chunk size for large images (stable compile shape)


def segmentation_rise_forward(x, masks, w, b):
    B, C, H, W = x.shape
    n_masks = masks.shape[0]
    HW = H * W
    HW_pad = _round_up(HW, 128)        # lane-dense spatial axis
    N_pad = _round_up(n_masks, 128)    # dense MXU contraction axis

    x_flat = x[0].reshape(C, HW)
    masks_flat = masks.reshape(n_masks, HW)

    # The 1x1-conv surrogate model is linear: model(img)[pix] = wx[pix] + b
    # with wx = sum_c w[c]*img[c], hence model(mask*x) = mask*wx + b.  This
    # lets the old full-image masked-model kernel be folded away entirely.
    wx = jnp.sum(w[:, None] * x_flat, axis=0)            # (HW,)
    base_out = (wx + b[0]).reshape(H, W)                 # model(x)

    # Data-dependent pixel selection (output > output.mean()), row-major order
    # matching the reference's nested for-x/for-y loops.  Only this small bool
    # map syncs to host.
    sel = np.asarray(base_out > jnp.mean(base_out)).reshape(-1)
    flat_idx = np.flatnonzero(sel).astype(np.int32)
    P = int(flat_idx.shape[0])
    if P == 0:
        return jnp.zeros((0, H, W), jnp.float32)

    # Shared RHS: masks, zero-padded and cast to bf16 for the MXU contraction
    # (padded rows/cols contribute nothing; halves repeated HBM streaming).
    masks_bf16 = jnp.pad(
        masks_flat, ((0, N_pad - n_masks), (0, HW_pad - HW))
    ).astype(jnp.bfloat16)

    # Pixel chunking: all chunks share one padded shape, so a single compiled
    # kernel is reused (reference chunks at 1000 px; concatenated result is
    # identical).  Small-P case is padded to >=256 rows to fill the MXU.
    if P <= _PIX_CHUNK:
        chunk_pad = max(256, _round_up(P, 256))
    else:
        chunk_pad = _PIX_CHUNK
    settings = _tpu_settings()
    saliency_call = _build_saliency_call(chunk_pad, HW_pad, N_pad, n_masks, settings)

    sal_chunks = []
    for start in range(0, P, chunk_pad):
        idx_np = flat_idx[start:start + chunk_pad]
        cl = int(idx_np.shape[0])
        idx = jnp.asarray(idx_np)
        # p[i, j] = model(mask_i * x)[pixel_j] = mask_i[pixel_j]*wx[pixel_j] + b
        # Tiny (N, cl) op; built directly in (mask, pixel) layout -> no host
        # transpose, kernel contracts dim 0 of both operands.
        p = masks_flat[:, idx] * wx[idx][None, :] + b[0]              # (N, cl) f32
        p_pad = jnp.pad(
            p.astype(jnp.bfloat16),
            ((0, N_pad - n_masks), (0, chunk_pad - cl)),
        )
        sal_pad = saliency_call(p_pad, masks_bf16)                    # (chunk_pad, HW_pad)
        sal_chunks.append(sal_pad[:cl, :HW])

    sal = jnp.concatenate(sal_chunks, axis=0).reshape(P, H, W)
    return sal


class RISEResult:
    """JAX analogue of the reference RISEResult (merge helpers)."""

    def __init__(self, saliencies):
        self.saliencies = saliencies

    def max(self):
        return np.asarray(jnp.max(self.saliencies, axis=0))

    def mean(self):
        return np.asarray(jnp.mean(self.saliencies, axis=0))


if __name__ == "__main__":
    key = jax.random.PRNGKey(0)
    C, H, W = 4, 16, 16
    N_MASKS = 8

    k_img, k_mask, k_w, k_b = jax.random.split(key, 4)

    # Input image, NCHW like PyTorch (the reference forward assumes batch 1).
    x = jax.random.normal(k_img, (1, C, H, W), dtype=jnp.float32)

    # RISE masks (N, 1, H, W), generated deterministically.
    masks = generate_masks(k_mask, N_MASKS, s=4, p1=0.5, input_size=(H, W))

    # Synthetic segmentation model parameters: 1x1 conv (C -> 1) + bias.
    w = 0.1 * jax.random.normal(k_w, (C,), dtype=jnp.float32)
    b = 0.1 * jax.random.normal(k_b, (1,), dtype=jnp.float32)

    sal = segmentation_rise_forward(x, masks, w, b)
    sal = jax.block_until_ready(sal)

    # Lightweight correctness check against a pure-JAX f32 reference
    # (bf16 MXU operands -> generous tolerance).
    x_flat = x[0].reshape(C, H * W)
    wx = jnp.sum(w[:, None] * x_flat, axis=0)
    base = (wx + b[0]).reshape(H, W)
    sel = np.asarray(base > jnp.mean(base)).reshape(-1)
    idx = np.flatnonzero(sel)
    if idx.size:
        masks_flat = masks.reshape(N_MASKS, H * W)
        p_ref = masks_flat[:, idx] * wx[idx][None, :] + b[0]
        sal_ref = (p_ref.T @ masks_flat / N_MASKS).reshape(-1, H, W)
        np.testing.assert_allclose(
            np.asarray(sal), np.asarray(sal_ref), rtol=5e-2, atol=1e-2
        )

    result = RISEResult(sal)
    if result.saliencies.shape[0] > 0:
        _ = result.max()
        _ = result.mean()
    print("KERNEL_OK")
</pallas_src>

<mosaic_0001>
module attributes {stable_mosaic.version = 11 : i64} {
  func.func @_saliency_kernel(%arg0: i32, %arg1: i32, %arg2: i32, %arg3: memref<128x256xbf16, #tpu.memory_space<vmem>>, %arg4: memref<128x256xbf16, #tpu.memory_space<vmem>>, %arg5: memref<256x256xf32, #tpu.memory_space<vmem>>, %arg6: memref<256x256xf32, #tpu.memory_space<vmem>>) attributes {dimension_semantics = [#tpu.dimension_semantics<parallel>, #tpu.dimension_semantics<parallel>, #tpu.dimension_semantics<arbitrary>], iteration_bounds = array<i64: 1, 1, 1>, scalar_prefetch = 0 : i64, scratch_operands = 1 : i64, tpu.core_type = #tpu.core_type<tc>, window_params = [{transform_indices = @transform_0, window_bounds = array<i64: 128, 256>}, {transform_indices = @transform_1, window_bounds = array<i64: 128, 256>}, {transform_indices = @transform_2, window_bounds = array<i64: 256, 256>}]} {
    %c0_i32 = arith.constant 0 : i32
    %0 = arith.cmpi eq, %arg2, %c0_i32 : i32
    %1 = arith.extui %0 : i1 to i32
    %c0_i32_0 = arith.constant 0 : i32
    %2 = arith.cmpi ne, %1, %c0_i32_0 : i32
    scf.if %2 {
      %cst_10 = arith.constant 0.000000e+00 : f32
      %12 = vector.broadcast %cst_10 : f32 to vector<256x256xf32>
      %c0_11 = arith.constant 0 : index
      %c0_12 = arith.constant 0 : index
      %13 = vector.load %arg6[%c0_11, %c0_12] : memref<256x256xf32, #tpu.memory_space<vmem>>, vector<256x256xf32>
      tpu.vector_store %arg6[%c0_11, %c0_12], %12 {strides = array<i32>} : memref<256x256xf32, #tpu.memory_space<vmem>>, vector<256x256xf32>,
    } else {
    }
    %c0 = arith.constant 0 : index
    %c0_1 = arith.constant 0 : index
    %3 = vector.load %arg6[%c0, %c0_1] : memref<256x256xf32, #tpu.memory_space<vmem>>, vector<256x256xf32>
    %c0_2 = arith.constant 0 : index
    %c0_3 = arith.constant 0 : index
    %4 = vector.load %arg3[%c0_2, %c0_3] : memref<128x256xbf16, #tpu.memory_space<vmem>>, vector<128x256xbf16>
    %c0_4 = arith.constant 0 : index
    %c0_5 = arith.constant 0 : index
    %5 = vector.load %arg4[%c0_4, %c0_5] : memref<128x256xbf16, #tpu.memory_space<vmem>>, vector<128x256xbf16>
    %cst = arith.constant dense<0.000000e+00> : vector<256x256xf32>
    %6 = tpu.matmul %4, %5, %cst {dimension_numbers = #tpu.dot_dimension_numbers<[0], [0], [1], [1], [0, 1, 1, 1], [], []>} : vector<128x256xbf16>, vector<128x256xbf16>, vector<256x256xf32> -> vector<256x256xf32>
    %7 = arith.addf %3, %6 : vector<256x256xf32>
    %c0_6 = arith.constant 0 : index
    %c0_7 = arith.constant 0 : index
    %8 = vector.load %arg6[%c0_6, %c0_7] : memref<256x256xf32, #tpu.memory_space<vmem>>, vector<256x256xf32>
    tpu.vector_store %arg6[%c0_6, %c0_7], %7 {strides = array<i32>} : memref<256x256xf32, #tpu.memory_space<vmem>>, vector<256x256xf32>,
    %c0_i32_8 = arith.constant 0 : i32
    %9 = arith.cmpi eq, %arg2, %c0_i32_8 : i32
    %10 = arith.extui %9 : i1 to i32
    %c0_i32_9 = arith.constant 0 : i32
    %11 = arith.cmpi ne, %10, %c0_i32_9 : i32
    scf.if %11 {
      %c0_10 = arith.constant 0 : index
      %c0_11 = arith.constant 0 : index
      %12 = vector.load %arg6[%c0_10, %c0_11] : memref<256x256xf32, #tpu.memory_space<vmem>>, vector<256x256xf32>
      %cst_12 = arith.constant 1.250000e-01 : f32
      %13 = vector.broadcast %cst_12 : f32 to vector<256x256xf32>
      %14 = arith.mulf %12, %13 : vector<256x256xf32>
      %c0_13 = arith.constant 0 : index
      %c0_14 = arith.constant 0 : index
      %15 = vector.load %arg5[%c0_13, %c0_14] : memref<256x256xf32, #tpu.memory_space<vmem>>, vector<256x256xf32>
      tpu.vector_store %arg5[%c0_13, %c0_14], %14 {strides = array<i32>} : memref<256x256xf32, #tpu.memory_space<vmem>>, vector<256x256xf32>,
    } else {
    }
    return
  }
  func.func @transform_0(%arg0: i32, %arg1: i32, %arg2: i32) -> (i32, i32) {
    %c0_i32 = arith.constant 0 : i32
    return %arg2, %arg0 : i32, i32
  }
  func.func @transform_1(%arg0: i32, %arg1: i32, %arg2: i32) -> (i32, i32) {
    %c0_i32 = arith.constant 0 : i32
    return %arg2, %arg1 : i32, i32
  }
  func.func @transform_2(%arg0: i32, %arg1: i32, %arg2: i32) -> (i32, i32) {
    %c0_i32 = arith.constant 0 : i32
    return %arg0, %arg1 : i32, i32
  }
}

</mosaic_0001>

<bundles_post_ra>
// kernel: tpu_custom_call.1
= control target key start
LH: loop header
LB: loop body
LE: loop exit
PB: predicated region body
PF: predicated region fallthrough
CT: control target
= control target key end

     0   :  { %7 = vsyncpa [#allocation4], 0  ;;  %s1182_s0 = inlined_call_operand.hbm [shape: bf16[128,256], index: 0, kind: input, shape index: {}]   ;;  %s1183_s1 = inlined_call_operand.hbm [shape: bf16[128,256], index: 1, kind: input, shape index: {}]   ;;  %s1184_s2 = inlined_call_operand.hbm [shape: f32[256,256], index: 2, kind: output, shape index: {}]  }
   0x1   :  { %8 = vsyncpa [#allocation7], 0 }
   0x2   :  { %9 = vsyncpa [#allocation5], 0  ;;  %s1107_s9 = smov [#allocation3]   ;;  %s1035_s13 = scalar_lea.hbm %s1182_s0, 2048 }
   0x3   :  { %s15_s10 = sshll.u32 %s1107_s9, 4  ;;  %p1036_p0 = scmp.ne.s32.totalorder %s1182_s0, %s1035_s13  ;;  %s16_s10 = int_to_ptr.vmem [resolvable:$true] %s15_s10 }
   0x4   :  { %p1039_p1 = scmp.lt.u32.totalorder %s1035_s13, %s1182_s0 }
   0x6   :  { %p1041_p2 = pnand %p1039_p1, %p1036_p0 }
   0x8   :  { %1044 = shalt.err (!%p1041_p2)
}
   0x9   :  { %s1045_s18 = scalar_lea.vmem %s16_s10, 2048  ;;  %p1050_p4 = scmp.lt.s32.totalorder %s16_s10, %s16_s10 }
   0xa   :  { %p1046_p3 = scmp.ne.s32.totalorder %s16_s10, %s1045_s18  ;;  %p1051_p5 = scmp.lt.s32.totalorder %s1045_s18, %s1045_s18 }
   0xc   :  { %p1052_p6 = por %p1051_p5, %p1050_p4 }
   0xe   :  { %p1053_p7 = pnand %p1052_p6, %p1046_p3 }
  0x10   :  { %1056 = shalt.err (!%p1053_p7)
}
  0x11   :  { %s1108_s19 = smov 128   ;;  %s1109_s20 = smov 8  }
  0x12   :  { %21 = dma.hbm_to_vmem [thread:$0]  %s1182_s0, 2048, %s16_s10, [#allocation4], %s1108_s19, %s1108_s19, %s1109_s20  }
  0x13   :  { %s1110_s23 = smov [#allocation6]   ;;  %s1057_s27 = scalar_lea.hbm %s1183_s1, 2048 }
  0x14   :  { %s27_s24 = sshll.u32 %s1110_s23, 4  ;;  %p1058_p8 = scmp.ne.s32.totalorder %s1183_s1, %s1057_s27  ;;  %s28_s24 = int_to_ptr.vmem [resolvable:$true] %s27_s24 }
  0x15   :  { %p1061_p9 = scmp.lt.u32.totalorder %s1057_s27, %s1183_s1 }
  0x17   :  { %p1063_p10 = pnand %p1061_p9, %p1058_p8 }
  0x19   :  { %1066 = shalt.err (!%p1063_p10)
}
  0x1a   :  { %s1067_s4 = scalar_lea.vmem %s28_s24, 2048  ;;  %p1072_p12 = scmp.lt.s32.totalorder %s28_s24, %s28_s24 }
  0x1b   :  { %p1068_p11 = scmp.ne.s32.totalorder %s28_s24, %s1067_s4  ;;  %p1073_p13 = scmp.lt.s32.totalorder %s1067_s4, %s1067_s4 }
  0x1d   :  { %p1074_p0 = por %p1073_p13, %p1072_p12 }
  0x1f   :  { %p1075_p1 = pnand %p1074_p0, %p1068_p11 }
  0x21   :  { %1078 = shalt.err (!%p1075_p1)
}
  0x22   :  { %33 = dma.hbm_to_vmem [thread:$0]  %s1183_s1, 2048, %s28_s24, [#allocation7], %s1108_s19, %s1108_s19, %s1109_s20  }
  0x23   :  { %1101 = dma.done.wait [#allocation4], 2048  }
  0x24   :  { %1102 = vsyncadd [#allocation4], 4294965248 }
  0x25   :  { %1103 = dma.done.wait [#allocation7], 2048  }
  0x26   :  { %1104 = vsyncadd [#allocation7], 4294965248  ;;  %v1111_v0 = vmov 0   ;;  %v987_v1 = vld [vmem:[#allocation3 + $0x4] ss:$8 sps:$4 sm:$0xff]   ;;  %s1112_s1 = smov [#allocation8]  }
  0x27   :  { %429 = vmatprep.mubr.bf16.mxu0 %v1111_v0  ;;  %509 = vmatprep.mubr.bf16.mxu1 %v1111_v0  ;;  %v989_v2 = vld [vmem:[#allocation3] ss:$8 sps:$4 sm:$0xff]   ;;  %v990_v3 = vld [vmem:[#allocation3 + $0x14] ss:$8 sps:$4 sm:$0xff]   ;;  %v992_v4 = vld [vmem:[#allocation3 + $0x10] ss:$8 sps:$4 sm:$0xff]  }
  0x28   :  { %301 = vxpose.xlu1.c.b16.start [1/8] %v987_v1, 128  ;;  %285 = vxpose.xlu0.c.b16.start [1/8] %v989_v2, 128  ;;  %v993_v5 = vld [vmem:[#allocation3 + $0x24] ss:$8 sps:$4 sm:$0xff]   ;;  %v995_v6 = vld [vmem:[#allocation3 + $0x20] ss:$8 sps:$4 sm:$0xff]   ;;  %v996_v7 = vld [vmem:[#allocation3 + $0x34] ss:$8 sps:$4 sm:$0xff]  }
  0x29   :  { %v998_v8 = vld [vmem:[#allocation3 + $0x30] ss:$8 sps:$4 sm:$0xff]   ;;  %v1011_v9 = vld [vmem:[#allocation6 + $0x4] ss:$8 sps:$4 sm:$0xff]   ;;  %v1013_v10 = vld [vmem:[#allocation6] ss:$8 sps:$4 sm:$0xff]  }
  0x2a   :  { %v1014_v11 = vld [vmem:[#allocation6 + $0x14] ss:$8 sps:$4 sm:$0xff]   ;;  %397 = vmatprep.subr.bf16.mxu0 %v1011_v9  ;;  %963 = vmatprep.subr.bf16.mxu1 %v1011_v9  ;;  %v999_v12 = vld [vmem:[#allocation3 + $0x44] ss:$8 sps:$4 sm:$0xff]   ;;  %v1016_v13 = vld [vmem:[#allocation6 + $0x10] ss:$8 sps:$4 sm:$0xff]  }
  0x2b   :  { %398 = vmatpush1.bf16.msra.mxu0 %v1013_v10  ;;  %v1001_v14 = vld [vmem:[#allocation3 + $0x40] ss:$8 sps:$4 sm:$0xff]   ;;  %971 = vmatpush1.bf16.msra.mxu1 %v1013_v10  ;;  %v1017_v15 = vld [vmem:[#allocation6 + $0x24] ss:$8 sps:$4 sm:$0xff]   ;;  %v1002_v16 = vld [vmem:[#allocation3 + $0x54] ss:$8 sps:$4 sm:$0xff]  }
  0x2c   :  { %302 = vxpose.xlu1.c.b16.cont [2/8] %v990_v3, 128  ;;  %286 = vxpose.xlu0.c.b16.cont [2/8] %v992_v4, 128  ;;  %v1019_v17 = vld [vmem:[#allocation6 + $0x20] ss:$8 sps:$4 sm:$0xff]   ;;  %v1004_v18 = vld [vmem:[#allocation3 + $0x50] ss:$8 sps:$4 sm:$0xff]   ;;  %v1020_v19 = vld [vmem:[#allocation6 + $0x34] ss:$8 sps:$4 sm:$0xff]  }
  0x2d   :  { %399 = vmatprep.subr.bf16.mxu0 %v1014_v11  ;;  %964 = vmatprep.subr.bf16.mxu1 %v1014_v11  ;;  %v1005_v20 = vld [vmem:[#allocation3 + $0x64] ss:$8 sps:$4 sm:$0xff]   ;;  %v1022_v21 = vld [vmem:[#allocation6 + $0x30] ss:$8 sps:$4 sm:$0xff]   ;;  %v1007_v22 = vld [vmem:[#allocation3 + $0x60] ss:$8 sps:$4 sm:$0xff]  }
  0x2e   :  { %v1023_v23 = vld [vmem:[#allocation6 + $0x44] ss:$8 sps:$4 sm:$0xff]   ;;  %v1008_v24 = vld [vmem:[#allocation3 + $0x74] ss:$8 sps:$4 sm:$0xff]   ;;  %v1025_v25 = vld [vmem:[#allocation6 + $0x40] ss:$8 sps:$4 sm:$0xff]  }
  0x2f   :  { %400 = vmatpush1.bf16.msra.mxu0 %v1016_v13  ;;  %972 = vmatpush1.bf16.msra.mxu1 %v1016_v13  ;;  %v1010_v26 = vld [vmem:[#allocation3 + $0x70] ss:$8 sps:$4 sm:$0xff]   ;;  %v1026_v27 = vld [vmem:[#allocation6 + $0x54] ss:$8 sps:$4 sm:$0xff]   ;;  %v1029_v29 = vld [vmem:[#allocation6 + $0x64] ss:$8 sps:$4 sm:$0xff]  }
  0x30   :  { %303 = vxpose.xlu1.c.b16.cont [3/8] %v993_v5, 128  ;;  %287 = vxpose.xlu0.c.b16.cont [3/8] %v995_v6, 128  ;;  %v1028_v28 = vld [vmem:[#allocation6 + $0x50] ss:$8 sps:$4 sm:$0xff]   ;;  %v1031_v30 = vld [vmem:[#allocation6 + $0x60] ss:$8 sps:$4 sm:$0xff]   ;;  %v1032_v31 = vld [vmem:[#allocation6 + $0x74] ss:$8 sps:$4 sm:$0xff]  }
  0x31   :  { %401 = vmatprep.subr.bf16.mxu0 %v1017_v15  ;;  %965 = vmatprep.subr.bf16.mxu1 %v1017_v15  ;;  %v1034_v32 = vld [vmem:[#allocation6 + $0x70] ss:$8 sps:$4 sm:$0xff]   ;;  %s918_s6 = sshll.u32 %s1112_s1, 4  ;;  %s919_s6 = int_to_ptr.vmem [resolvable:$true] %s918_s6 }
  0x32   :  { %s1079_s7 = scalar_lea.vmem %s919_s6, 8192  ;;  %p1084_p3 = scmp.lt.s32.totalorder %s919_s6, %s919_s6 }
  0x33   :  { %402 = vmatpush1.bf16.msra.mxu0 %v1019_v17  ;;  %973 = vmatpush1.bf16.msra.mxu1 %v1019_v17  ;;  %p1080_p2 = scmp.ne.s32.totalorder %s919_s6, %s1079_s7  ;;  %p1085_p4 = scmp.lt.s32.totalorder %s1079_s7, %s1079_s7 }
  0x34   :  { %304 = vxpose.xlu1.c.b16.cont [4/8] %v996_v7, 128  ;;  %288 = vxpose.xlu0.c.b16.cont [4/8] %v998_v8, 128 }
  0x35   :  { %403 = vmatprep.subr.bf16.mxu0 %v1020_v19  ;;  %966 = vmatprep.subr.bf16.mxu1 %v1020_v19  ;;  %p1086_p5 = por %p1085_p4, %p1084_p3 }
  0x37   :  { %404 = vmatpush1.bf16.msra.mxu0 %v1022_v21  ;;  %974 = vmatpush1.bf16.msra.mxu1 %v1022_v21  ;;  %p1087_p6 = pnand %p1086_p5, %p1080_p2 }
  0x38   :  { %305 = vxpose.xlu1.c.b16.cont [5/8] %v999_v12, 128  ;;  %289 = vxpose.xlu0.c.b16.cont [5/8] %v1001_v14, 128 }
  0x39   :  { %405 = vmatprep.subr.bf16.mxu0 %v1023_v23  ;;  %967 = vmatprep.subr.bf16.mxu1 %v1023_v23 }
  0x3b   :  { %406 = vmatpush1.bf16.msra.mxu0 %v1025_v25  ;;  %975 = vmatpush1.bf16.msra.mxu1 %v1025_v25 }
  0x3c   :  { %306 = vxpose.xlu1.c.b16.cont [6/8] %v1002_v16, 128  ;;  %290 = vxpose.xlu0.c.b16.cont [6/8] %v1004_v18, 128 }
  0x3d   :  { %407 = vmatprep.subr.bf16.mxu0 %v1026_v27  ;;  %968 = vmatprep.subr.bf16.mxu1 %v1026_v27 }
  0x3f   :  { %408 = vmatpush1.bf16.msra.mxu0 %v1028_v28  ;;  %976 = vmatpush1.bf16.msra.mxu1 %v1028_v28 }
  0x40   :  { %307 = vxpose.xlu1.c.b16.cont [7/8] %v1005_v20, 128  ;;  %291 = vxpose.xlu0.c.b16.cont [7/8] %v1007_v22, 128 }
  0x41   :  { %409 = vmatprep.subr.bf16.mxu0 %v1029_v29  ;;  %969 = vmatprep.subr.bf16.mxu1 %v1029_v29 }
  0x43   :  { %410 = vmatpush1.bf16.msra.mxu0 %v1031_v30  ;;  %977 = vmatpush1.bf16.msra.mxu1 %v1031_v30 }
  0x44   :  { %308 = vxpose.xlu1.c.b16.end [8/8] %v1008_v24, 128  ;;  %292 = vxpose.xlu0.c.b16.end [8/8] %v1010_v26, 128 }
  0x45   :  { %411 = vmatprep.subr.bf16.mxu0 %v1032_v31  ;;  %970 = vmatprep.subr.bf16.mxu1 %v1032_v31 }
  0x47   :  { %412 = vmatpush1.bf16.msra.mxu0 %v1034_v32  ;;  %978 = vmatpush1.bf16.msra.mxu1 %v1034_v32 }
  0x8e   :  { %v309_v33 = vpop.trf.xlu1  ;;  %v293_v34 = vpop.trf.xlu0 }
  0x8f   :  { %510 = vmatmul.mubr.bf16.vlgmr.msra.gmra.mrb[0].mxu1 %v309_v33  ;;  %430 = vmatmul.mubr.bf16.vlgmr.msra.gmra.mrb[0].mxu0 %v293_v34 }
  0x90   :  { %519 = vmatprep.mubr.bf16.mxu1 %v1111_v0  ;;  %439 = vmatprep.mubr.bf16.mxu0 %v1111_v0 }
  0x92   :  { %v310_v35 = vpop.trf.xlu1  ;;  %v294_v36 = vpop.trf.xlu0 }
  0x96   :  { %v311_v37 = vpop.trf.xlu1  ;;  %v295_v38 = vpop.trf.xlu0 }
  0x97   :  { %520 = vmatmul.mubr.bf16.gmra.mrb[4].mxu1 %v310_v35  ;;  %440 = vmatmul.mubr.bf16.gmra.mrb[4].mxu0 %v294_v36 }
  0x98   :  { %529 = vmatprep.mubr.bf16.mxu1 %v1111_v0  ;;  %449 = vmatprep.mubr.bf16.mxu0 %v1111_v0 }
  0x9a   :  { %v312_v39 = vpop.trf.xlu1  ;;  %v296_v40 = vpop.trf.xlu0 }
  0x9e   :  { %v313_v41 = vpop.trf.xlu1  ;;  %v297_v42 = vpop.trf.xlu0 }
  0x9f   :  { %530 = vmatmul.mubr.bf16.gmra.mrb[8].mxu1 %v311_v37  ;;  %450 = vmatmul.mubr.bf16.gmra.mrb[8].mxu0 %v295_v38 }
  0xa0   :  { %539 = vmatprep.mubr.bf16.mxu1 %v1111_v0  ;;  %459 = vmatprep.mubr.bf16.mxu0 %v1111_v0 }
  0xa2   :  { %v314_v43 = vpop.trf.xlu1  ;;  %v298_v44 = vpop.trf.xlu0 }
  0xa6   :  { %v315_v45 = vpop.trf.xlu1  ;;  %v299_v46 = vpop.trf.xlu0 }
  0xa7   :  { %540 = vmatmul.mubr.bf16.gmra.mrb[12].mxu1 %v312_v39  ;;  %460 = vmatmul.mubr.bf16.gmra.mrb[12].mxu0 %v296_v40 }
  0xa8   :  { %549 = vmatprep.mubr.bf16.mxu1 %v1111_v0  ;;  %469 = vmatprep.mubr.bf16.mxu0 %v1111_v0 }
  0xaa   :  { %v316_v47 = vpop.trf.xlu1  ;;  %v300_v48 = vpop.trf.xlu0 }
  0xaf   :  { %550 = vmatmul.mubr.bf16.gmra.mrb[16].mxu1 %v313_v41  ;;  %470 = vmatmul.mubr.bf16.gmra.mrb[16].mxu0 %v297_v42 }
  0xb0   :  { %559 = vmatprep.mubr.bf16.mxu1 %v1111_v0  ;;  %479 = vmatprep.mubr.bf16.mxu0 %v1111_v0 }
  0xb7   :  { %560 = vmatmul.mubr.bf16.gmra.mrb[20].mxu1 %v314_v43  ;;  %480 = vmatmul.mubr.bf16.gmra.mrb[20].mxu0 %v298_v44 }
  0xb8   :  { %569 = vmatprep.mubr.bf16.mxu1 %v1111_v0  ;;  %489 = vmatprep.mubr.bf16.mxu0 %v1111_v0 }
  0xbf   :  { %570 = vmatmul.mubr.bf16.gmra.mrb[24].mxu1 %v315_v45  ;;  %490 = vmatmul.mubr.bf16.gmra.mrb[24].mxu0 %v299_v46 }
  0xc0   :  { %579 = vmatprep.mubr.bf16.mxu1 %v1111_v0  ;;  %499 = vmatprep.mubr.bf16.mxu0 %v1111_v0 }
  0xc7   :  { %580 = vmatmul.mubr.bf16.gmra.mrb[28].mxu1 %v316_v47  ;;  %500 = vmatmul.mubr.bf16.gmra.mrb[28].mxu0 %v300_v48 }
 0x162   :  { %v511_v49 = vpop.f32.mrb[0].mxu1  ;;  %v431_v50 = vpop.f32.mrb[0].mxu0 }
 0x163   :  { %v817_v51 = vmul.f32 0.125, %v511_v49  ;;  %v513_v52 = vpop.f32.mrb[1].mxu1  ;;  %v785_v53 = vmul.f32 0.125, %v431_v50  ;;  %v433_v54 = vpop.f32.mrb[1].mxu0 }
 0x164   :  { %v818_v55 = vmul.f32 0.125, %v513_v52  ;;  %v515_v56 = vpop.f32.mrb[2].mxu1  ;;  %v786_v57 = vmul.f32 0.125, %v433_v54  ;;  %v435_v58 = vpop.f32.mrb[2].mxu0 }
 0x165   :  { %881 = vst [vmem:[#allocation8 + $0x100] sm:$0xff] %v817_v51  ;;  %v819_v59 = vmul.f32 0.125, %v515_v56  ;;  %v517_v60 = vpop.f32.mrb[3].mxu1  ;;  %849 = vst [vmem:[#allocation8] sm:$0xff] %v785_v53  ;;  %v787_v61 = vmul.f32 0.125, %v435_v58  ;;  %v437_v62 = vpop.f32.mrb[3].mxu0 }
 0x166   :  { %882 = vst [vmem:[#allocation8 + $0x108] sm:$0xff] %v818_v55  ;;  %v820_v63 = vmul.f32 0.125, %v517_v60  ;;  %850 = vst [vmem:[#allocation8 + $0x8] sm:$0xff] %v786_v57  ;;  %v788_v0 = vmul.f32 0.125, %v437_v62 }
 0x167   :  { %883 = vst [vmem:[#allocation8 + $0x110] sm:$0xff] %v819_v59  ;;  %851 = vst [vmem:[#allocation8 + $0x10] sm:$0xff] %v787_v61 }
 0x168   :  { %884 = vst [vmem:[#allocation8 + $0x118] sm:$0xff] %v820_v63  ;;  %852 = vst [vmem:[#allocation8 + $0x18] sm:$0xff] %v788_v0 }
 0x16a   :  { %v521_v1 = vpop.f32.mrb[4].mxu1  ;;  %v441_v2 = vpop.f32.mrb[4].mxu0 }
 0x16b   :  { %v821_v3 = vmul.f32 0.125, %v521_v1  ;;  %v523_v4 = vpop.f32.mrb[5].mxu1  ;;  %v789_v5 = vmul.f32 0.125, %v441_v2  ;;  %v443_v6 = vpop.f32.mrb[5].mxu0 }
 0x16c   :  { %v822_v7 = vmul.f32 0.125, %v523_v4  ;;  %v525_v8 = vpop.f32.mrb[6].mxu1  ;;  %v790_v9 = vmul.f32 0.125, %v443_v6  ;;  %v445_v10 = vpop.f32.mrb[6].mxu0 }
 0x16d   :  { %885 = vst [vmem:[#allocation8 + $0x120] sm:$0xff] %v821_v3  ;;  %v823_v11 = vmul.f32 0.125, %v525_v8  ;;  %v527_v12 = vpop.f32.mrb[7].mxu1  ;;  %853 = vst [vmem:[#allocation8 + $0x20] sm:$0xff] %v789_v5  ;;  %v791_v13 = vmul.f32 0.125, %v445_v10  ;;  %v447_v14 = vpop.f32.mrb[7].mxu0 }
 0x16e   :  { %886 = vst [vmem:[#allocation8 + $0x128] sm:$0xff] %v822_v7  ;;  %v824_v15 = vmul.f32 0.125, %v527_v12  ;;  %854 = vst [vmem:[#allocation8 + $0x28] sm:$0xff] %v790_v9  ;;  %v792_v16 = vmul.f32 0.125, %v447_v14 }
 0x16f   :  { %887 = vst [vmem:[#allocation8 + $0x130] sm:$0xff] %v823_v11  ;;  %855 = vst [vmem:[#allocation8 + $0x30] sm:$0xff] %v791_v13 }
 0x170   :  { %888 = vst [vmem:[#allocation8 + $0x138] sm:$0xff] %v824_v15  ;;  %856 = vst [vmem:[#allocation8 + $0x38] sm:$0xff] %v792_v16 }
 0x172   :  { %v531_v17 = vpop.f32.mrb[8].mxu1  ;;  %v451_v18 = vpop.f32.mrb[8].mxu0 }
 0x173   :  { %v825_v19 = vmul.f32 0.125, %v531_v17  ;;  %v533_v20 = vpop.f32.mrb[9].mxu1  ;;  %v793_v21 = vmul.f32 0.125, %v451_v18  ;;  %v453_v22 = vpop.f32.mrb[9].mxu0 }
 0x174   :  { %v826_v23 = vmul.f32 0.125, %v533_v20  ;;  %v535_v24 = vpop.f32.mrb[10].mxu1  ;;  %v794_v25 = vmul.f32 0.125, %v453_v22  ;;  %v455_v26 = vpop.f32.mrb[10].mxu0 }
 0x175   :  { %889 = vst [vmem:[#allocation8 + $0x140] sm:$0xff] %v825_v19  ;;  %v827_v27 = vmul.f32 0.125, %v535_v24  ;;  %v537_v28 = vpop.f32.mrb[11].mxu1  ;;  %857 = vst [vmem:[#allocation8 + $0x40] sm:$0xff] %v793_v21  ;;  %v795_v29 = vmul.f32 0.125, %v455_v26  ;;  %v457_v30 = vpop.f32.mrb[11].mxu0 }
 0x176   :  { %890 = vst [vmem:[#allocation8 + $0x148] sm:$0xff] %v826_v23  ;;  %v828_v31 = vmul.f32 0.125, %v537_v28  ;;  %858 = vst [vmem:[#allocation8 + $0x48] sm:$0xff] %v794_v25  ;;  %v796_v32 = vmul.f32 0.125, %v457_v30 }
 0x177   :  { %891 = vst [vmem:[#allocation8 + $0x150] sm:$0xff] %v827_v27  ;;  %859 = vst [vmem:[#allocation8 + $0x50] sm:$0xff] %v795_v29 }
 0x178   :  { %892 = vst [vmem:[#allocation8 + $0x158] sm:$0xff] %v828_v31  ;;  %860 = vst [vmem:[#allocation8 + $0x58] sm:$0xff] %v796_v32 }
 0x17a   :  { %v541_v33 = vpop.f32.mrb[12].mxu1  ;;  %v461_v34 = vpop.f32.mrb[12].mxu0 }
 0x17b   :  { %v829_v35 = vmul.f32 0.125, %v541_v33  ;;  %v543_v36 = vpop.f32.mrb[13].mxu1  ;;  %v797_v37 = vmul.f32 0.125, %v461_v34  ;;  %v463_v38 = vpop.f32.mrb[13].mxu0 }
 0x17c   :  { %v830_v39 = vmul.f32 0.125, %v543_v36  ;;  %v545_v40 = vpop.f32.mrb[14].mxu1  ;;  %v798_v41 = vmul.f32 0.125, %v463_v38  ;;  %v465_v42 = vpop.f32.mrb[14].mxu0 }
 0x17d   :  { %893 = vst [vmem:[#allocation8 + $0x160] sm:$0xff] %v829_v35  ;;  %v831_v43 = vmul.f32 0.125, %v545_v40  ;;  %v547_v44 = vpop.f32.mrb[15].mxu1  ;;  %861 = vst [vmem:[#allocation8 + $0x60] sm:$0xff] %v797_v37  ;;  %v799_v45 = vmul.f32 0.125, %v465_v42  ;;  %v467_v46 = vpop.f32.mrb[15].mxu0 }
 0x17e   :  { %894 = vst [vmem:[#allocation8 + $0x168] sm:$0xff] %v830_v39  ;;  %v832_v47 = vmul.f32 0.125, %v547_v44  ;;  %862 = vst [vmem:[#allocation8 + $0x68] sm:$0xff] %v798_v41  ;;  %v800_v48 = vmul.f32 0.125, %v467_v46 }
 0x17f   :  { %895 = vst [vmem:[#allocation8 + $0x170] sm:$0xff] %v831_v43  ;;  %863 = vst [vmem:[#allocation8 + $0x70] sm:$0xff] %v799_v45 }
 0x180   :  { %896 = vst [vmem:[#allocation8 + $0x178] sm:$0xff] %v832_v47  ;;  %864 = vst [vmem:[#allocation8 + $0x78] sm:$0xff] %v800_v48 }
 0x182   :  { %v551_v49 = vpop.f32.mrb[16].mxu1  ;;  %v471_v50 = vpop.f32.mrb[16].mxu0 }
 0x183   :  { %v833_v51 = vmul.f32 0.125, %v551_v49  ;;  %v553_v52 = vpop.f32.mrb[17].mxu1  ;;  %v801_v53 = vmul.f32 0.125, %v471_v50  ;;  %v473_v54 = vpop.f32.mrb[17].mxu0 }
 0x184   :  { %v834_v55 = vmul.f32 0.125, %v553_v52  ;;  %v555_v56 = vpop.f32.mrb[18].mxu1  ;;  %v802_v57 = vmul.f32 0.125, %v473_v54  ;;  %v475_v58 = vpop.f32.mrb[18].mxu0 }
 0x185   :  { %897 = vst [vmem:[#allocation8 + $0x180] sm:$0xff] %v833_v51  ;;  %v835_v59 = vmul.f32 0.125, %v555_v56  ;;  %v557_v60 = vpop.f32.mrb[19].mxu1  ;;  %865 = vst [vmem:[#allocation8 + $0x80] sm:$0xff] %v801_v53  ;;  %v803_v61 = vmul.f32 0.125, %v475_v58  ;;  %v477_v62 = vpop.f32.mrb[19].mxu0 }
 0x186   :  { %898 = vst [vmem:[#allocation8 + $0x188] sm:$0xff] %v834_v55  ;;  %v836_v63 = vmul.f32 0.125, %v557_v60  ;;  %866 = vst [vmem:[#allocation8 + $0x88] sm:$0xff] %v802_v57  ;;  %v804_v0 = vmul.f32 0.125, %v477_v62 }
 0x187   :  { %899 = vst [vmem:[#allocation8 + $0x190] sm:$0xff] %v835_v59  ;;  %867 = vst [vmem:[#allocation8 + $0x90] sm:$0xff] %v803_v61 }
 0x188   :  { %900 = vst [vmem:[#allocation8 + $0x198] sm:$0xff] %v836_v63  ;;  %868 = vst [vmem:[#allocation8 + $0x98] sm:$0xff] %v804_v0 }
 0x18a   :  { %v561_v1 = vpop.f32.mrb[20].mxu1  ;;  %v481_v2 = vpop.f32.mrb[20].mxu0 }
 0x18b   :  { %v837_v3 = vmul.f32 0.125, %v561_v1  ;;  %v563_v4 = vpop.f32.mrb[21].mxu1  ;;  %v805_v5 = vmul.f32 0.125, %v481_v2  ;;  %v483_v6 = vpop.f32.mrb[21].mxu0 }
 0x18c   :  { %v838_v7 = vmul.f32 0.125, %v563_v4  ;;  %v565_v8 = vpop.f32.mrb[22].mxu1  ;;  %v806_v9 = vmul.f32 0.125, %v483_v6  ;;  %v485_v10 = vpop.f32.mrb[22].mxu0 }
 0x18d   :  { %901 = vst [vmem:[#allocation8 + $0x1a0] sm:$0xff] %v837_v3  ;;  %v839_v11 = vmul.f32 0.125, %v565_v8  ;;  %v567_v12 = vpop.f32.mrb[23].mxu1  ;;  %869 = vst [vmem:[#allocation8 + $0xa0] sm:$0xff] %v805_v5  ;;  %v807_v13 = vmul.f32 0.125, %v485_v10  ;;  %v487_v14 = vpop.f32.mrb[23].mxu0 }
 0x18e   :  { %902 = vst [vmem:[#allocation8 + $0x1a8] sm:$0xff] %v838_v7  ;;  %v840_v15 = vmul.f32 0.125, %v567_v12  ;;  %870 = vst [vmem:[#allocation8 + $0xa8] sm:$0xff] %v806_v9  ;;  %v808_v16 = vmul.f32 0.125, %v487_v14 }
 0x18f   :  { %903 = vst [vmem:[#allocation8 + $0x1b0] sm:$0xff] %v839_v11  ;;  %871 = vst [vmem:[#allocation8 + $0xb0] sm:$0xff] %v807_v13 }
 0x190   :  { %904 = vst [vmem:[#allocation8 + $0x1b8] sm:$0xff] %v840_v15  ;;  %872 = vst [vmem:[#allocation8 + $0xb8] sm:$0xff] %v808_v16 }
 0x192   :  { %v571_v17 = vpop.f32.mrb[24].mxu1  ;;  %v491_v18 = vpop.f32.mrb[24].mxu0 }
 0x193   :  { %v841_v19 = vmul.f32 0.125, %v571_v17  ;;  %v573_v20 = vpop.f32.mrb[25].mxu1  ;;  %v809_v21 = vmul.f32 0.125, %v491_v18  ;;  %v493_v22 = vpop.f32.mrb[25].mxu0 }
 0x194   :  { %v842_v23 = vmul.f32 0.125, %v573_v20  ;;  %v575_v24 = vpop.f32.mrb[26].mxu1  ;;  %v810_v25 = vmul.f32 0.125, %v493_v22  ;;  %v495_v26 = vpop.f32.mrb[26].mxu0 }
 0x195   :  { %905 = vst [vmem:[#allocation8 + $0x1c0] sm:$0xff] %v841_v19  ;;  %v843_v27 = vmul.f32 0.125, %v575_v24  ;;  %v577_v28 = vpop.f32.mrb[27].mxu1  ;;  %873 = vst [vmem:[#allocation8 + $0xc0] sm:$0xff] %v809_v21  ;;  %v811_v29 = vmul.f32 0.125, %v495_v26  ;;  %v497_v30 = vpop.f32.mrb[27].mxu0 }
 0x196   :  { %906 = vst [vmem:[#allocation8 + $0x1c8] sm:$0xff] %v842_v23  ;;  %v844_v31 = vmul.f32 0.125, %v577_v28  ;;  %874 = vst [vmem:[#allocation8 + $0xc8] sm:$0xff] %v810_v25  ;;  %v812_v32 = vmul.f32 0.125, %v497_v30 }
 0x197   :  { %907 = vst [vmem:[#allocation8 + $0x1d0] sm:$0xff] %v843_v27  ;;  %875 = vst [vmem:[#allocation8 + $0xd0] sm:$0xff] %v811_v29 }
 0x198   :  { %908 = vst [vmem:[#allocation8 + $0x1d8] sm:$0xff] %v844_v31  ;;  %876 = vst [vmem:[#allocation8 + $0xd8] sm:$0xff] %v812_v32 }
 0x19a   :  { %v581_v33 = vpop.f32.mrb[28].mxu1  ;;  %v501_v34 = vpop.f32.mrb[28].mxu0 }
 0x19b   :  { %v845_v35 = vmul.f32 0.125, %v581_v33  ;;  %v583_v36 = vpop.f32.mrb[29].mxu1  ;;  %v813_v37 = vmul.f32 0.125, %v501_v34  ;;  %v503_v38 = vpop.f32.mrb[29].mxu0 }
 0x19c   :  { %v846_v39 = vmul.f32 0.125, %v583_v36  ;;  %v585_v40 = vpop.f32.mrb[30].mxu1  ;;  %v814_v41 = vmul.f32 0.125, %v503_v38  ;;  %v505_v42 = vpop.f32.mrb[30].mxu0 }
 0x19d   :  { %909 = vst [vmem:[#allocation8 + $0x1e0] sm:$0xff] %v845_v35  ;;  %v847_v43 = vmul.f32 0.125, %v585_v40  ;;  %v587_v44 = vpop.f32.mrb[31].mxu1  ;;  %877 = vst [vmem:[#allocation8 + $0xe0] sm:$0xff] %v813_v37  ;;  %v815_v45 = vmul.f32 0.125, %v505_v42  ;;  %v507_v46 = vpop.f32.mrb[31].mxu0 }
 0x19e   :  { %910 = vst [vmem:[#allocation8 + $0x1e8] sm:$0xff] %v846_v39  ;;  %v848_v47 = vmul.f32 0.125, %v587_v44  ;;  %878 = vst [vmem:[#allocation8 + $0xe8] sm:$0xff] %v814_v41  ;;  %v816_v48 = vmul.f32 0.125, %v507_v46 }
 0x19f   :  { %911 = vst [vmem:[#allocation8 + $0x1f0] sm:$0xff] %v847_v43  ;;  %879 = vst [vmem:[#allocation8 + $0xf0] sm:$0xff] %v815_v45 }
 0x1a0   :  { %912 = vst [vmem:[#allocation8 + $0x1f8] sm:$0xff] %v848_v47  ;;  %880 = vst [vmem:[#allocation8 + $0xf8] sm:$0xff] %v816_v48 }
 0x1a1   :  { %1090 = shalt.err (!%p1087_p6)
}
 0x1a2   :  { %s1091_s10 = scalar_lea.hbm %s1184_s2, 8192 }
 0x1a3   :  { %p1092_p7 = scmp.ne.s32.totalorder %s1184_s2, %s1091_s10  ;;  %p1095_p8 = scmp.lt.u32.totalorder %s1091_s10, %s1184_s2 }
 0x1a5   :  { %p1097_p9 = pnand %p1095_p8, %p1092_p7 }
 0x1a7   :  { %1100 = shalt.err (!%p1097_p9)
}
 0x1a8   :  { %s1113_s15 = smov 256   ;;  %s1114_s16 = smov 16  }
 0x1a9   :  { %924 = dma.vmem_to_hbm [thread:$0]  %s919_s6, 8192, %s1184_s2, [#allocation5], %s1113_s15, %s1113_s15, %s1114_s16  }
 0x1aa   :  { %1105 = dma.done.wait [#allocation5], 8192  }
 0x1ab   :  { %1106 = vsyncadd [#allocation5], 4294959104 }
 0x1ac   :  { %928 = vsyncpa [#allocation4], 1 }
 0x1ad   :  { %929 = vsyncpa [#allocation7], 1 }
 0x1ae   :  { %930 = vsyncpa [#allocation5], 1 }

</bundles_post_ra>
